<compile_context>
chip_gen: v6e
topology: v6e:2x2x1
jax: 0.10.0
libtpu: 0.0.40
codegen_flags: <defaults>
</compile_context>

<pallas_src>
import functools

import numpy as np
import jax
import jax.numpy as jnp
from jax import lax
from jax.experimental import pallas as pl
from jax.experimental.pallas import tpu as pltpu


def _round_up(x, m):
    return ((x + m - 1) // m) * m


def _encoder_kernel(x_ref, wf_ref, w2p_ref, b2_ref, hi_ref, lo_ref, sc_ref,
                    o_ref, *, pack, d_model, chunk, num_chunks):
    D = pack * d_model

    # Hoist the (1, D) -> (chunk, D) broadcasts of the per-lane constant rows
    # out of the inner loop (JAX does not CSE broadcast_in_dim in loop bodies).
    hi_b = jnp.broadcast_to(hi_ref[...], (chunk, D))
    lo_b = jnp.broadcast_to(lo_ref[...], (chunk, D))   # lo == 10*sc, reused as scale
    sc_b = jnp.broadcast_to(sc_ref[...], (chunk, D))
    b2_b = jnp.broadcast_to(b2_ref[...], (chunk, D))

    def body(ci, carry):
        r0 = pl.multiple_of(ci * chunk, chunk)
        xc = x_ref[pl.ds(r0, chunk), :]                          # (chunk, K_in)

        # ---- MLP branch (MXU) -------------------------------------------------
        # Layer 1 for all `pack` packed rows as one small-K matmul against the
        # fused block-diagonal weight; b1 rides the constant-1 input column.
        pre = jnp.dot(xc, wf_ref[...], preferred_element_type=jnp.float32)
        h = jnp.maximum(pre, 0.0)                                # (chunk, PH_a)
        mm = jnp.dot(h, w2p_ref[...], preferred_element_type=jnp.float32)  # (chunk, D)

        # ---- digit-split branch (exact f32 on the VPU) ------------------------
        # hi/lo/sc are zero on MLP lanes, so no masking is needed; the digit
        # lanes of `mm` are exactly zero by construction of w2p.
        xb = jnp.concatenate(
            [jnp.broadcast_to(xc[:, p:p + 1], (chunk, d_model))
             for p in range(pack)], axis=-1)                     # (chunk, D)
        dig = jnp.floor(xb * hi_b) * sc_b - jnp.floor(xb * lo_b) * lo_b

        o_ref[pl.ds(r0, chunk), :] = mm + b2_b + dig             # dense 128-lane store
        return carry

    lax.fori_loop(0, num_chunks, body, 0, unroll=min(2, num_chunks))


def learnable_fractional_encoder(x, w1, b1, w2, b2, *, num_digits=3,
                                 tile_rows=32768, chunk_rows=128):
    """x: (batch, num_elements) f32 -> (batch, num_elements, d_model).

    w1: (1, hidden)     == nn.Linear(1, hidden).weight.T
    b1: (hidden,)
    w2: (hidden, d_out) == nn.Linear(hidden, d_out).weight.T
    b2: (d_out,)        with d_out = d_model - num_digits
    """
    B, N = x.shape
    hidden = w1.shape[1]
    d_out = w2.shape[1]
    d_model = d_out + num_digits
    M = B * N
    f32 = jnp.float32

    # Pack `pack` consecutive scalars into one lane-dense 128-wide output row.
    pack = 128 // d_model if (d_model <= 128 and 128 % d_model == 0) else 1
    D = pack * d_model
    K_in = _round_up(pack + 1, 8)        # x columns + constant-1 column (sublane pad)
    PH = pack * hidden
    PH_a = _round_up(PH, 128)            # 128-lane aligned hidden width

    mp = pl.cdiv(M, pack)                # packed rows holding real data
    mp_arr = _round_up(mp, 8)            # kernel output rows (sublane aligned only)

    # ---- tiling --------------------------------------------------------------
    chunk = max(8, min((int(chunk_rows) // 8) * 8, mp_arr))
    tmp_max = (mp_arr // chunk) * chunk
    tmp = min(_round_up(max(int(tile_rows) // pack, chunk), chunk), tmp_max)
    nsteps = pl.cdiv(mp_arr, tmp)
    if nsteps == 1 and mp_arr >= 2 * chunk:
        nsteps = 2                       # give both v7x TensorCores work
    tmp = min(_round_up(pl.cdiv(mp_arr, nsteps), chunk), tmp_max)  # balanced blocks
    num_chunks = tmp // chunk
    grid = (pl.cdiv(mp_arr, tmp),)       # ragged last block handled by Pallas

    # ---- operand preparation (tiny vs. the output traffic) -------------------
    x_flat = x.reshape(-1).astype(f32)
    pad = mp_arr * pack - M
    if pad:
        x_flat = jnp.pad(x_flat, (0, pad))
    x2 = x_flat.reshape(mp_arr, pack)
    x_in = jnp.concatenate(
        [x2, jnp.ones((mp_arr, 1), f32),
         jnp.zeros((mp_arr, K_in - pack - 1), f32)], axis=1)     # (mp_arr, K_in)

    w1r = w1.reshape(1, hidden).astype(f32)
    b1r = b1.reshape(-1).astype(f32)
    w2f = w2.astype(f32)
    b2f = b2.reshape(-1).astype(f32)

    # Fused layer-1 weight: block-diagonal w1 plus a b1 row hit by the 1-column.
    wf = jnp.zeros((K_in, PH_a), f32)
    wf = wf.at[:pack, :PH].set(jnp.kron(jnp.eye(pack, dtype=f32), w1r))
    wf = wf.at[pack, :PH].set(jnp.tile(b1r, pack))

    # Block-diagonal layer-2 weight: hidden group p only feeds lane group p.
    w2p = jnp.zeros((PH_a, D), f32)
    for p in range(pack):
        w2p = w2p.at[p * hidden:(p + 1) * hidden,
                     p * d_model:p * d_model + d_out].set(w2f)

    # Packed second bias (zero on digit lanes).
    b2row = jnp.tile(jnp.concatenate([b2f, jnp.zeros((num_digits,), f32)]),
                     pack).reshape(1, D)

    # Per-lane digit constants (zero on MLP lanes).  Note 10*sc == lo, so `lo`
    # also serves as the folded scale on the second floor() term.
    hi = np.zeros((1, D), np.float32)
    lo = np.zeros((1, D), np.float32)
    sc = np.zeros((1, D), np.float32)
    for p in range(pack):
        base = p * d_model + d_out
        for j in range(num_digits):
            hi[0, base + j] = 10.0 ** (j + 1)
            lo[0, base + j] = 10.0 ** j
            sc[0, base + j] = 10.0 ** (j - 1)
    hi, lo, sc = jnp.asarray(hi), jnp.asarray(lo), jnp.asarray(sc)

    kernel = functools.partial(_encoder_kernel, pack=pack, d_model=d_model,
                               chunk=chunk, num_chunks=num_chunks)
    const = lambda shape: pl.BlockSpec(shape, lambda i: (0, 0))

    out_packed = pl.pallas_call(
        kernel,
        out_shape=jax.ShapeDtypeStruct((mp_arr, D), f32),
        grid=grid,
        in_specs=[pl.BlockSpec((tmp, K_in), lambda i: (i, 0)),   # packed x + ones col
                  const((K_in, PH_a)),   # fused layer-1 weight (w1 blocks + b1 row)
                  const((PH_a, D)),      # block-diagonal layer-2 weight
                  const((1, D)),         # packed b2
                  const((1, D)),         # hi
                  const((1, D)),         # lo (== 10*sc)
                  const((1, D))],        # sc
        out_specs=pl.BlockSpec((tmp, D), lambda i: (i, 0)),
        compiler_params=pltpu.CompilerParams(
            dimension_semantics=("parallel",),
            vmem_limit_bytes=32 * 1024 * 1024,
        ),
    )(x_in, wf, w2p, b2row, hi, lo, sc)

    out = out_packed.reshape(mp_arr * pack, d_model)
    if mp_arr * pack != M:
        # Only non-(8*pack)-aligned sizes pay this one extra output copy.
        out = out[:M]
    return out.reshape(B, N, d_model)


def _reference(x, w1, b1, w2, b2, num_digits=3):
    """Pure-JAX reference mirroring the PyTorch module."""
    xu = x[..., None]                                            # (B, N, 1)
    h = jnp.maximum(xu @ w1 + b1, 0.0)                           # (B, N, H)
    mlp = h @ w2 + b2                                            # (B, N, d_out)
    comps = []
    for i in range(1, num_digits + 1):
        digit = jnp.floor(x * 10.0 ** i) - jnp.floor(x * 10.0 ** (i - 1)) * 10.0
        comps.append((digit / 10.0 * 10.0 ** (i - 1))[..., None])
    return jnp.concatenate([mlp] + comps, axis=-1)


if __name__ == "__main__":
    batch, num_elements = 2, 8
    d_model, hidden_dim, num_digits = 32, 64, 3
    mlp_output_dim = d_model - num_digits

    key = jax.random.PRNGKey(0)
    kx, kw1, kb1, kw2, kb2, kx2 = jax.random.split(key, 6)

    # Synthetic parameters (shapes from nn.Linear(1,H), nn.Linear(H, d_out)).
    w1 = jax.random.normal(kw1, (1, hidden_dim), jnp.float32) * 0.5
    b1 = jax.random.normal(kb1, (hidden_dim,), jnp.float32) * 0.1
    w2 = jax.random.normal(kw2, (hidden_dim, mlp_output_dim), jnp.float32) * 0.1
    b2 = jax.random.normal(kb2, (mlp_output_dim,), jnp.float32) * 0.1

    # Fractional inputs in [0, 1).
    x = jax.random.uniform(kx, (batch, num_elements), jnp.float32)

    out = jax.block_until_ready(
        learnable_fractional_encoder(x, w1, b1, w2, b2, num_digits=num_digits))
    ref = _reference(x, w1, b1, w2, b2, num_digits=num_digits)
    assert out.shape == (batch, num_elements, d_model), out.shape
    # MLP lanes: loose tolerance — Mosaic and XLA may use different bf16
    # multi-pass decompositions for f32 matmuls; structural bugs are O(0.1+).
    assert jnp.allclose(out[..., :mlp_output_dim], ref[..., :mlp_output_dim],
                        atol=3e-2, rtol=3e-2), "MLP-lane mismatch (small case)"
    # Digit lanes: exact elementwise f32 in both paths (ulp-level diffs only).
    assert jnp.allclose(out[..., mlp_output_dim:], ref[..., mlp_output_dim:],
                        atol=1e-4, rtol=1e-4), "digit-lane mismatch (small case)"

    # Non-divisible size: exercises input padding, the ragged final grid block,
    # a multi-step grid, the multi-chunk inner loop and the [:M] tail slice.
    xb = jax.random.uniform(kx2, (3, 333), jnp.float32)
    outb = jax.block_until_ready(
        learnable_fractional_encoder(xb, w1, b1, w2, b2, num_digits=num_digits,
                                     tile_rows=384, chunk_rows=32))
    refb = _reference(xb, w1, b1, w2, b2, num_digits=num_digits)
    assert outb.shape == (3, 333, d_model), outb.shape
    assert jnp.allclose(outb[..., :mlp_output_dim], refb[..., :mlp_output_dim],
                        atol=3e-2, rtol=3e-2), "MLP-lane mismatch (ragged case)"
    assert jnp.allclose(outb[..., mlp_output_dim:], refb[..., mlp_output_dim:],
                        atol=1e-4, rtol=1e-4), "digit-lane mismatch (ragged case)"

    print("KERNEL_OK")
</pallas_src>

<mosaic_0001>
module attributes {stable_mosaic.version = 11 : i64} {
  func.func @_encoder_kernel(%arg0: i32, %arg1: memref<8x8xf32, #tpu.memory_space<vmem>>, %arg2: memref<8x256xf32, #tpu.memory_space<vmem>>, %arg3: memref<256x128xf32, #tpu.memory_space<vmem>>, %arg4: memref<1x128xf32, #tpu.memory_space<vmem>>, %arg5: memref<1x128xf32, #tpu.memory_space<vmem>>, %arg6: memref<1x128xf32, #tpu.memory_space<vmem>>, %arg7: memref<1x128xf32, #tpu.memory_space<vmem>>, %arg8: memref<8x128xf32, #tpu.memory_space<vmem>>) attributes {dimension_semantics = [#tpu.dimension_semantics<parallel>], iteration_bounds = array<i64: 1>, scalar_prefetch = 0 : i64, scratch_operands = 0 : i64, tpu.core_type = #tpu.core_type<tc>, window_params = [{transform_indices = @transform_0, window_bounds = array<i64: 8, 8>}, {pipeline_mode = #tpu.pipeline_mode<synchronous>, transform_indices = @transform_1, window_bounds = array<i64: 8, 256>}, {pipeline_mode = #tpu.pipeline_mode<synchronous>, transform_indices = @transform_2, window_bounds = array<i64: 256, 128>}, {pipeline_mode = #tpu.pipeline_mode<synchronous>, transform_indices = @transform_3, window_bounds = array<i64: 1, 128>}, {pipeline_mode = #tpu.pipeline_mode<synchronous>, transform_indices = @transform_4, window_bounds = array<i64: 1, 128>}, {pipeline_mode = #tpu.pipeline_mode<synchronous>, transform_indices = @transform_5, window_bounds = array<i64: 1, 128>}, {pipeline_mode = #tpu.pipeline_mode<synchronous>, transform_indices = @transform_6, window_bounds = array<i64: 1, 128>}, {transform_indices = @transform_7, window_bounds = array<i64: 8, 128>}]} {
    %c0 = arith.constant 0 : index
    %c0_0 = arith.constant 0 : index
    %0 = vector.load %arg5[%c0, %c0_0] : memref<1x128xf32, #tpu.memory_space<vmem>>, vector<1x128xf32>
    %1 = vector.shape_cast %0 : vector<1x128xf32> to vector<1x128xf32>
    %2 = vector.broadcast %1 : vector<1x128xf32> to vector<8x128xf32>
    %c0_1 = arith.constant 0 : index
    %c0_2 = arith.constant 0 : index
    %3 = vector.load %arg6[%c0_1, %c0_2] : memref<1x128xf32, #tpu.memory_space<vmem>>, vector<1x128xf32>
    %4 = vector.shape_cast %3 : vector<1x128xf32> to vector<1x128xf32>
    %5 = vector.broadcast %4 : vector<1x128xf32> to vector<8x128xf32>
    %c0_3 = arith.constant 0 : index
    %c0_4 = arith.constant 0 : index
    %6 = vector.load %arg7[%c0_3, %c0_4] : memref<1x128xf32, #tpu.memory_space<vmem>>, vector<1x128xf32>
    %7 = vector.shape_cast %6 : vector<1x128xf32> to vector<1x128xf32>
    %8 = vector.broadcast %7 : vector<1x128xf32> to vector<8x128xf32>
    %c0_5 = arith.constant 0 : index
    %c0_6 = arith.constant 0 : index
    %9 = vector.load %arg4[%c0_5, %c0_6] : memref<1x128xf32, #tpu.memory_space<vmem>>, vector<1x128xf32>
    %10 = vector.shape_cast %9 : vector<1x128xf32> to vector<1x128xf32>
    %11 = vector.broadcast %10 : vector<1x128xf32> to vector<8x128xf32>
    %c0_i32 = arith.constant 0 : i32
    %c8_i32 = arith.constant 8 : i32
    %12 = arith.muli %c0_i32, %c8_i32 : i32
    %13 = tpu.assume_multiple %12, 8 : i32
    %14 = arith.index_cast %13 : i32 to index
    %c0_7 = arith.constant 0 : index
    %15 = vector.load %arg1[%14, %c0_7] : memref<8x8xf32, #tpu.memory_space<vmem>>, vector<8x8xf32>
    %c0_8 = arith.constant 0 : index
    %c0_9 = arith.constant 0 : index
    %16 = vector.load %arg2[%c0_8, %c0_9] : memref<8x256xf32, #tpu.memory_space<vmem>>, vector<8x256xf32>
    %cst = arith.constant dense<0.000000e+00> : vector<8x256xf32>
    %17 = tpu.matmul %15, %16, %cst {dimension_numbers = #tpu.dot_dimension_numbers<[1], [0], [0], [1], [0, 0, 1, 1], [], []>} : vector<8x8xf32>, vector<8x256xf32>, vector<8x256xf32> -> vector<8x256xf32>
    %cst_10 = arith.constant 0.000000e+00 : f32
    %18 = vector.broadcast %cst_10 : f32 to vector<8x256xf32>
    %19 = arith.maximumf %17, %18 : vector<8x256xf32>
    %c0_11 = arith.constant 0 : index
    %c0_12 = arith.constant 0 : index
    %20 = vector.load %arg3[%c0_11, %c0_12] : memref<256x128xf32, #tpu.memory_space<vmem>>, vector<256x128xf32>
    %cst_13 = arith.constant dense<0.000000e+00> : vector<8x128xf32>
    %21 = tpu.matmul %19, %20, %cst_13 {dimension_numbers = #tpu.dot_dimension_numbers<[1], [0], [0], [1], [0, 0, 1, 1], [], []>} : vector<8x256xf32>, vector<256x128xf32>, vector<8x128xf32> -> vector<8x128xf32>
    %22 = vector.extract_strided_slice %15 {offsets = [0, 0], sizes = [8, 1], strides = [1, 1]} : vector<8x8xf32> to vector<8x1xf32>
    %23 = vector.shape_cast %22 : vector<8x1xf32> to vector<8x1xf32>
    %24 = vector.broadcast %23 : vector<8x1xf32> to vector<8x32xf32>
    %25 = vector.extract_strided_slice %15 {offsets = [0, 1], sizes = [8, 1], strides = [1, 1]} : vector<8x8xf32> to vector<8x1xf32>
    %26 = vector.shape_cast %25 : vector<8x1xf32> to vector<8x1xf32>
    %27 = vector.broadcast %26 : vector<8x1xf32> to vector<8x32xf32>
    %28 = vector.extract_strided_slice %15 {offsets = [0, 2], sizes = [8, 1], strides = [1, 1]} : vector<8x8xf32> to vector<8x1xf32>
    %29 = vector.shape_cast %28 : vector<8x1xf32> to vector<8x1xf32>
    %30 = vector.broadcast %29 : vector<8x1xf32> to vector<8x32xf32>
    %31 = vector.extract_strided_slice %15 {offsets = [0, 3], sizes = [8, 1], strides = [1, 1]} : vector<8x8xf32> to vector<8x1xf32>
    %32 = vector.shape_cast %31 : vector<8x1xf32> to vector<8x1xf32>
    %33 = vector.broadcast %32 : vector<8x1xf32> to vector<8x32xf32>
    %34 = tpu.concatenate %24, %27, %30, %33 in 1 : vector<8x32xf32>, vector<8x32xf32>, vector<8x32xf32>, vector<8x32xf32> -> vector<8x128xf32>
    %35 = arith.mulf %34, %2 : vector<8x128xf32>
    %36 = math.floor %35 : vector<8x128xf32>
    %37 = arith.mulf %36, %8 : vector<8x128xf32>
    %38 = arith.mulf %34, %5 : vector<8x128xf32>
    %39 = math.floor %38 : vector<8x128xf32>
    %40 = arith.mulf %39, %5 : vector<8x128xf32>
    %41 = arith.subf %37, %40 : vector<8x128xf32>
    %42 = arith.addf %21, %11 : vector<8x128xf32>
    %43 = arith.addf %42, %41 : vector<8x128xf32>
    %44 = arith.index_cast %13 : i32 to index
    %c0_14 = arith.constant 0 : index
    %45 = vector.load %arg8[%44, %c0_14] : memref<8x128xf32, #tpu.memory_space<vmem>>, vector<8x128xf32>
    tpu.vector_store %arg8[%44, %c0_14], %43 {strides = array<i32>} : memref<8x128xf32, #tpu.memory_space<vmem>>, vector<8x128xf32>,
    %c1_i32 = arith.constant 1 : i32
    return
  }
  func.func @transform_0(%arg0: i32) -> (i32, i32) {
    %c0_i32 = arith.constant 0 : i32
    %c0_i32_0 = arith.constant 0 : i32
    return %arg0, %c0_i32 : i32, i32
  }
  func.func @transform_1(%arg0: i32) -> (i32, i32) {
    %c0_i32 = arith.constant 0 : i32
    %c0_i32_0 = arith.constant 0 : i32
    %c0_i32_1 = arith.constant 0 : i32
    return %c0_i32, %c0_i32_0 : i32, i32
  }
  func.func @transform_2(%arg0: i32) -> (i32, i32) {
    %c0_i32 = arith.constant 0 : i32
    %c0_i32_0 = arith.constant 0 : i32
    %c0_i32_1 = arith.constant 0 : i32
    return %c0_i32, %c0_i32_0 : i32, i32
  }
  func.func @transform_3(%arg0: i32) -> (i32, i32) {
    %c0_i32 = arith.constant 0 : i32
    %c0_i32_0 = arith.constant 0 : i32
    %c0_i32_1 = arith.constant 0 : i32
    return %c0_i32, %c0_i32_0 : i32, i32
  }
  func.func @transform_4(%arg0: i32) -> (i32, i32) {
    %c0_i32 = arith.constant 0 : i32
    %c0_i32_0 = arith.constant 0 : i32
    %c0_i32_1 = arith.constant 0 : i32
    return %c0_i32, %c0_i32_0 : i32, i32
  }
  func.func @transform_5(%arg0: i32) -> (i32, i32) {
    %c0_i32 = arith.constant 0 : i32
    %c0_i32_0 = arith.constant 0 : i32
    %c0_i32_1 = arith.constant 0 : i32
    return %c0_i32, %c0_i32_0 : i32, i32
  }
  func.func @transform_6(%arg0: i32) -> (i32, i32) {
    %c0_i32 = arith.constant 0 : i32
    %c0_i32_0 = arith.constant 0 : i32
    %c0_i32_1 = arith.constant 0 : i32
    return %c0_i32, %c0_i32_0 : i32, i32
  }
  func.func @transform_7(%arg0: i32) -> (i32, i32) {
    %c0_i32 = arith.constant 0 : i32
    %c0_i32_0 = arith.constant 0 : i32
    return %arg0, %c0_i32 : i32, i32
  }
}

</mosaic_0001>

<bundles_post_ra>
// kernel: tpu_custom_call.1
= control target key start
LH: loop header
LB: loop body
LE: loop exit
PB: predicated region body
PF: predicated region fallthrough
CT: control target
= control target key end

     0   :  { %12 = vsyncpa [#allocation3], 0  ;;  %s545_s0 = inlined_call_operand.hbm [shape: f32[8,8], index: 0, kind: input, shape index: {}]   ;;  %s546_s1 = inlined_call_operand.hbm [shape: f32[8,256], index: 1, kind: input, shape index: {}]   ;;  %s547_s2 = inlined_call_operand.hbm [shape: f32[256,128], index: 2, kind: input, shape index: {}]   ;;  %s548_s3 = inlined_call_operand.vmem [shape: f32[1,128], index: 3, kind: input, shape index: {}]   ;;  %s549_s4 = inlined_call_operand.vmem [shape: f32[1,128], index: 4, kind: input, shape index: {}]   ;;  %s550_s5 = inlined_call_operand.vmem [shape: f32[1,128], index: 5, kind: input, shape index: {}]   ;;  %s551_s6 = inlined_call_operand.vmem [shape: f32[1,128], index: 6, kind: input, shape index: {}]   ;;  %s552_s7 = inlined_call_operand.hbm [shape: f32[8,128], index: 7, kind: output, shape index: {}]  }
   0x1   :  { %13 = vsyncpa [#allocation6], 0 }
   0x2   :  { %14 = vsyncpa [#allocation4], 0  ;;  %s463_s24 = smov [#allocation5]   ;;  %s464_s26 = smov [#allocation2]  }
   0x3   :  { %s31_s25 = sshll.u32 %s463_s24, 4  ;;  %s21_s27 = sshll.u32 %s464_s26, 4  ;;  %s32_s25 = int_to_ptr.vmem [resolvable:$true] %s31_s25  ;;  %s22_s27 = int_to_ptr.vmem [resolvable:$true] %s21_s27 }
   0x4   :  { %s385_s28 = scalar_lea.vmem %s32_s25, 256  ;;  %p390_p1 = scmp.lt.s32.totalorder %s32_s25, %s32_s25 }
   0x5   :  { %p386_p0 = scmp.ne.s32.totalorder %s32_s25, %s385_s28  ;;  %p391_p2 = scmp.lt.s32.totalorder %s385_s28, %s385_s28 }
   0x7   :  { %p392_p3 = por %p391_p2, %p390_p1 }
   0x9   :  { %p393_p4 = pnand %p392_p3, %p386_p0 }
   0xb   :  { %396 = shalt.err (!%p393_p4)
}
   0xc   :  { %34 = dma.hbm_to_vmem [thread:$0]  %s546_s1, 256, %s32_s25, [#allocation6]  }
   0xd   :  { %s405_s8 = scalar_lea.vmem %s22_s27, 128  ;;  %p410_p6 = scmp.lt.s32.totalorder %s22_s27, %s22_s27 }
   0xe   :  { %p406_p5 = scmp.ne.s32.totalorder %s22_s27, %s405_s8  ;;  %p411_p7 = scmp.lt.s32.totalorder %s405_s8, %s405_s8 }
  0x10   :  { %p412_p8 = por %p411_p7, %p410_p6 }
  0x12   :  { %p413_p9 = pnand %p412_p8, %p406_p5 }
  0x14   :  { %416 = shalt.err (!%p413_p9)
}
  0x15   :  { %24 = dma.hbm_to_vmem [thread:$0]  %s545_s0, 128, %s22_s27, [#allocation3]  }
  0x16   :  { %s465_s11 = smov [#allocation7]  }
  0x17   :  { %s40_s12 = sshll.u32 %s465_s11, 4  ;;  %s41_s12 = int_to_ptr.vmem [resolvable:$true] %s40_s12 }
  0x18   :  { %s425_s13 = scalar_lea.vmem %s41_s12, 4096  ;;  %p430_p11 = scmp.lt.s32.totalorder %s41_s12, %s41_s12 }
  0x19   :  { %p426_p10 = scmp.ne.s32.totalorder %s41_s12, %s425_s13  ;;  %p431_p12 = scmp.lt.s32.totalorder %s425_s13, %s425_s13 }
  0x1b   :  { %p432_p13 = por %p431_p12, %p430_p11 }
  0x1d   :  { %p433_p0 = pnand %p432_p13, %p426_p10 }
  0x1f   :  { %436 = shalt.err (!%p433_p0)
}
  0x20   :  { %s466_s1 = smov 128   ;;  %s467_s14 = smov 8  }
  0x21   :  { %46 = dma.hbm_to_vmem [thread:$0]  %s547_s2, 4096, %s41_s12, [#allocation6], %s466_s1, %s466_s1, %s467_s14  }
  0x22   :  { %457 = dma.done.wait [#allocation3], 128  }
  0x23   :  { %458 = vsyncadd [#allocation3], 4294967168 }
  0x24   :  { %459 = dma.done.wait [#allocation6], 4352  }
  0x25   :  { %460 = vsyncadd [#allocation6], 4294962944  ;;  %v468_v0 = vmov 0.0   ;;  %v94_v1 = vld [vmem:[#allocation5 + $0x8] sm:$0xff]  ;;  %v93_v2 = vld [vmem:[#allocation5] sm:$0xff]  ;;  %vm95_vm0 = vcmask 64512  }
  0x26   :  { %163 = vmatprep.mubr.f32.mxu0 %v468_v0  ;;  %v523_v3 = vld [vmem:[#allocation2] sm:$0xff]  ;;  %129 = vmatprep.subr.mxu0 %v94_v1  ;;  %v203_v4 = vld [vmem:[#allocation7 + $0xf8] sm:$0xff]  ;;  %v202_v6 = vld [vmem:[#allocation7 + $0xf0] sm:$0xff]  ;;  %v469_v36 = vmov 0   ;;  %v470_v37 = vmov 2   ;;  %v471_v38 = vmov 1  }
  0x27   :  { %v187_v5 = vld [vmem:[#allocation7 + $0x78] sm:$0xff]  ;;  %130 = vmatpush1.msra.mxu0 %v93_v2  ;;  %326 = vmatprep.subr.mxu1 %v203_v4  ;;  %v186_v7 = vld [vmem:[#allocation7 + $0x70] sm:$0xff]  ;;  %v201_v8 = vld [vmem:[#allocation7 + $0xe8] sm:$0xff]  ;;  %v472_v39 = vmov 3   ;;  %vm220_vm1 = vcmask 261120   ;;  %vm222_vm2 = vcmask 523264  }
  0x28   :  { %325 = vmatmul.mubr.msk.f32.vlgmr.msra.gmra.mxu0 %vm95_vm0, %v523_v3  ;;  %327 = vmatpush3.msra.mxu1 %v187_v5  ;;  %v185_v9 = vld [vmem:[#allocation7 + $0x68] sm:$0xff]  ;;  %v200_v10 = vld [vmem:[#allocation7 + $0xe0] sm:$0xff]  ;;  %v199_v12 = vld [vmem:[#allocation7 + $0xd8] sm:$0xff]  ;;  %vm224_vm3 = vcmask 785408  }
  0x29   :  { %328 = vmatprep.subr.mxu1 %v202_v6  ;;  %v184_v11 = vld [vmem:[#allocation7 + $0x60] sm:$0xff]  ;;  %v183_v13 = vld [vmem:[#allocation7 + $0x58] sm:$0xff]  ;;  %v198_v14 = vld [vmem:[#allocation7 + $0xd0] sm:$0xff]  ;;  %372 = vset.pattern.permute.xlu0 %v469_v36 }
  0x2a   :  { %329 = vmatpush3.msra.mxu1 %v186_v7  ;;  %v182_v15 = vld [vmem:[#allocation7 + $0x50] sm:$0xff]  ;;  %v197_v16 = vld [vmem:[#allocation7 + $0xc8] sm:$0xff]  ;;  %v196_v18 = vld [vmem:[#allocation7 + $0xc0] sm:$0xff]  ;;  %374 = vset.pattern.permute.xlu1 %v470_v37 }
  0x2b   :  { %330 = vmatprep.subr.mxu1 %v201_v8  ;;  %v181_v17 = vld [vmem:[#allocation7 + $0x48] sm:$0xff]  ;;  %v180_v19 = vld [vmem:[#allocation7 + $0x40] sm:$0xff]  ;;  %v195_v20 = vld [vmem:[#allocation7 + $0xb8] sm:$0xff]  ;;  %205 = vperm.xlu0 %372, %v523_v3  }
  0x2c   :  { %331 = vmatpush3.msra.mxu1 %v185_v9  ;;  %v179_v21 = vld [vmem:[#allocation7 + $0x38] sm:$0xff]  ;;  %v194_v22 = vld [vmem:[#allocation7 + $0xb0] sm:$0xff]  ;;  %v193_v24 = vld [vmem:[#allocation7 + $0xa8] sm:$0xff]  ;;  %213 = vperm.xlu1 %374, %v523_v3  }
  0x2d   :  { %332 = vmatprep.subr.mxu1 %v200_v10  ;;  %v178_v23 = vld [vmem:[#allocation7 + $0x30] sm:$0xff]  ;;  %v177_v25 = vld [vmem:[#allocation7 + $0x28] sm:$0xff]  ;;  %v192_v26 = vld [vmem:[#allocation7 + $0xa0] sm:$0xff] }
  0x2e   :  { %333 = vmatpush3.msra.mxu1 %v184_v11  ;;  %v176_v27 = vld [vmem:[#allocation7 + $0x20] sm:$0xff]  ;;  %v191_v28 = vld [vmem:[#allocation7 + $0x98] sm:$0xff]  ;;  %v190_v30 = vld [vmem:[#allocation7 + $0x90] sm:$0xff] }
  0x2f   :  { %334 = vmatprep.subr.mxu1 %v199_v12  ;;  %v175_v29 = vld [vmem:[#allocation7 + $0x18] sm:$0xff]  ;;  %v174_v31 = vld [vmem:[#allocation7 + $0x10] sm:$0xff]  ;;  %v189_v32 = vld [vmem:[#allocation7 + $0x88] sm:$0xff]  ;;  %373 = vset.pattern.permute.xlu0 %v471_v38 }
  0x30   :  { %335 = vmatpush3.msra.mxu1 %v183_v13  ;;  %v173_v33 = vld [vmem:[#allocation7 + $0x8] sm:$0xff]  ;;  %v188_v34 = vld [vmem:[#allocation7 + $0x80] sm:$0xff]  ;;  %375 = vset.pattern.permute.xlu1 %v472_v39 }
  0x31   :  { %336 = vmatprep.subr.mxu1 %v198_v14  ;;  %v172_v35 = vld [vmem:[#allocation7] sm:$0xff]  ;;  %209 = vperm.xlu0 %373, %v523_v3   ;;  %v321_v50 = vld [vmem:[%s549_s4] ss:$0 sm:$0xff]  ;;  %s473_s4 = smov [#allocation8]  }
  0x32   :  { %337 = vmatpush3.msra.mxu1 %v182_v15  ;;  %217 = vperm.xlu1 %375, %v523_v3   ;;  %v322_v51 = vld [vmem:[%s550_s5] ss:$0 sm:$0xff]  ;;  %s311_s5 = sshll.u32 %s473_s4, 4  ;;  %s312_s5 = int_to_ptr.vmem [resolvable:$true] %s311_s5 }
  0x33   :  { %338 = vmatprep.subr.mxu1 %v197_v16  ;;  %v323_v57 = vld [vmem:[%s551_s6] ss:$0 sm:$0xff]  ;;  %s437_s23 = scalar_lea.vmem %s312_s5, 128  ;;  %p442_p2 = scmp.lt.s32.totalorder %s312_s5, %s312_s5 }
  0x34   :  { %339 = vmatpush3.msra.mxu1 %v181_v17  ;;  %v324_v61 = vld [vmem:[%s548_s3] ss:$0 sm:$0xff]  ;;  %p438_p1 = scmp.ne.s32.totalorder %s312_s5, %s437_s23  ;;  %p443_p3 = scmp.lt.s32.totalorder %s437_s23, %s437_s23 }
  0x35   :  { %340 = vmatprep.subr.mxu1 %v196_v18  ;;  %376 = vset.pattern.permute.xlu0 %v472_v39 }
  0x36   :  { %341 = vmatpush3.msra.mxu1 %v180_v19  ;;  %p444_p4 = por %p443_p3, %p442_p2 }
  0x37   :  { %342 = vmatprep.subr.mxu1 %v195_v20 }
  0x38   :  { %343 = vmatpush3.msra.mxu1 %v179_v21  ;;  %p445_p5 = pnand %p444_p4, %p438_p1 }
  0x39   :  { %344 = vmatprep.subr.mxu1 %v194_v22 }
  0x3a   :  { %345 = vmatpush3.msra.mxu1 %v178_v23 }
  0x3b   :  { %346 = vmatprep.subr.mxu1 %v193_v24 }
  0x3c   :  { %347 = vmatpush3.msra.mxu1 %v177_v25 }
  0x3d   :  { %348 = vmatprep.subr.mxu1 %v192_v26 }
  0x3e   :  { %349 = vmatpush3.msra.mxu1 %v176_v27 }
  0x3f   :  { %350 = vmatprep.subr.mxu1 %v191_v28 }
  0x40   :  { %351 = vmatpush3.msra.mxu1 %v175_v29 }
  0x41   :  { %352 = vmatprep.subr.mxu1 %v190_v30 }
  0x42   :  { %353 = vmatpush3.msra.mxu1 %v174_v31 }
  0x43   :  { %354 = vmatprep.subr.mxu1 %v189_v32 }
  0x44   :  { %355 = vmatpush3.msra.mxu1 %v173_v33 }
  0x45   :  { %356 = vmatprep.subr.mxu1 %v188_v34 }
  0x46   :  { %357 = vmatpush3.msra.mxu1 %v172_v35 }
  0xa6   :  { %v206_v44 = vpop.permute.xlu0 %205 }
  0xa7   :  { %v214_v45 = vpop.permute.xlu1 %213 }
  0xac   :  { %v210_v46 = vpop.permute.xlu0 %209 }
  0xad   :  { %v221_v47 = vsel %vm220_vm1, %v206_v44, %v210_v46  ;;  %v218_v48 = vpop.permute.xlu1 %217 }
  0xae   :  { %v223_v49 = vsel %vm222_vm2, %v221_v47, %v214_v45 }
  0xaf   :  { %v225_v52 = vsel %vm224_vm3, %v223_v49, %v218_v48 }
  0xb0   :  { %v226_v53 = vmul.f32 %v321_v50, %v225_v52  ;;  %v229_v54 = vmul.f32 %v322_v51, %v225_v52 }
  0xb2   :  { %v227_v55 = vfloor.f32 %v226_v53  ;;  %v230_v56 = vfloor.f32 %v229_v54 }
  0xb4   :  { %v228_v59 = vmul.f32 %v323_v57, %v227_v55  ;;  %v231_v60 = vmul.f32 %v322_v51, %v230_v56 }
  0xb6   :  { %v232_v1 = vsub.f32 %v228_v59, %v231_v60 }
  0xe8   :  { %v165_v40 = vpop.f32.mrf.mxu0 }
  0xe9   :  { %v170_v43 = vmax.f32 %v165_v40, 0.0 }
  0xea   :  { %v167_v41 = vpop.f32.mrf.mxu0 }
  0xeb   :  { %v171_v42 = vmax.f32 %v167_v41, 0.0 }
  0xed   :  { %297 = vmatprep.mubr.f32.mxu1 %v171_v42 }
  0xee   :  { %298 = vmatmul.mubr.f32.vlgmr.msra.gmra.mxu1 %v170_v43 }
 0x1ae   :  { %v358_v58 = vpop.f32.mrf.mxu1 }
 0x1b0   :  { %v359_v62 = vpop.f32.mrf.mxu1 }
 0x1b1   :  { %v360_v63 = vadd.f32 %v359_v62, %v358_v58 }
 0x1b3   :  { %v300_v0 = vadd.f32 %v360_v63, %v324_v61 }
 0x1b5   :  { %v303_v2 = vadd.f32 %v300_v0, %v232_v1 }
 0x1b7   :  { %304 = vst [vmem:[#allocation8] sm:$0xff] %v303_v2 }
 0x1b8   :  { %448 = shalt.err (!%p445_p5)
}
 0x1b9   :  { %314 = dma.vmem_to_hbm [thread:$0]  %s312_s5, 128, %s552_s7, [#allocation4]  }
 0x1ba   :  { %461 = dma.done.wait [#allocation4], 128  }
 0x1bb   :  { %462 = vsyncadd [#allocation4], 4294967168 }
 0x1bc   :  { %318 = vsyncpa [#allocation3], 1 }
 0x1bd   :  { %319 = vsyncpa [#allocation6], 1 }
 0x1be   :  { %320 = vsyncpa [#allocation4], 1 }

</bundles_post_ra>
